<compile_context>
chip_gen: v6e
topology: v6e:2x2x1
jax: 0.10.0
libtpu: 0.0.40
codegen_flags: <defaults>
</compile_context>

<pallas_src>
import jax
import jax.numpy as jnp
from jax.experimental import pallas as pl
from jax.experimental.pallas import tpu as pltpu

_NEG_BIG = -1.0e30  # finite "-inf" for padded softmax lanes (avoids inf-inf)


def _round_up(x, m):
    return ((x + m - 1) // m) * m


def _dtnn_kernel(x_ref, w_ref, b_ref, o_ref):
    # x_ref: (TB, D), w_ref: (D, O_pad), b_ref: (1, O_pad), o_ref: (TB, O_pad)
    logits = jnp.dot(x_ref[...], w_ref[...],
                     preferred_element_type=jnp.float32) + b_ref[...]
    # Numerically-stable softmax over the last (lane) axis.  Padded columns
    # carry bias = -1e30 -> exp underflows to exactly 0.
    m = jnp.max(logits, axis=-1, keepdims=True)
    e = jnp.exp(logits - m)
    denom = jnp.sum(e, axis=-1, keepdims=True)
    o_ref[...] = (e / denom).astype(o_ref.dtype)  # exact divide (rows sum to 1)


def prepare_params(weight, bias, *, param_dtype=jnp.float32):
    """One-time parameter prep (outside the per-call hot path).

    weight: (O, D) PyTorch nn.Linear layout.  Returns:
      w_pad: (D, O_pad) pre-transposed, zero-padded, cast to param_dtype.
      b_pad: (1, O_pad) float32, padded lanes set to a large negative value.
      O:     true output dim.
    """
    O, D = weight.shape
    O_pad = _round_up(O, 128)
    w_pad = (jnp.zeros((D, O_pad), param_dtype)
             .at[:, :O].set(weight.T.astype(param_dtype)))
    b_pad = (jnp.full((1, O_pad), _NEG_BIG, dtype=jnp.float32)
             .at[0, :O].set(bias.astype(jnp.float32)))
    return w_pad, b_pad, O


def _pick_tile_b(B, tile_b, D, O_pad, x_bytes, w_bytes, vmem_budget):
    B8 = _round_up(B, 8)
    tb = min(_round_up(max(tile_b, 8), 8), B8)

    def vmem_use(t):
        # double-buffered x + out tiles, (default double-buffered) W and bias
        return (2 * t * D * x_bytes + 2 * t * O_pad * 4
                + 2 * D * O_pad * w_bytes + 2 * O_pad * 4)

    while tb > 8 and vmem_use(tb) > vmem_budget:
        tb = _round_up(tb // 2, 8)

    # Prefer a tile that divides the 8-rounded batch -> no jnp.pad HBM pass on x.
    if B8 % tb != 0:
        best, d = None, tb
        while d >= 8:
            if B8 % d == 0:
                best = d
                break
            d -= 8
        if best is not None and best >= max(8, tb // 4):
            tb = best

    # Megacore: give the "parallel" batch axis >= 2 steps when possible.
    if B8 // tb == 1 and tb >= 16:
        half = _round_up(tb // 2, 8)
        if B8 % half == 0:
            tb = half
    return tb


def discrete_time_nn_forward(x, w_pad, b_pad, out_features, *,
                             tile_b=256,
                             vmem_budget_bytes=40 * 1024 * 1024,
                             vmem_limit_bytes=48 * 1024 * 1024):
    """Fused linear + softmax (DiscreteTimeNN.forward).

    Args:
      x:            (B, D) float input.
      w_pad, b_pad: pre-padded params from prepare_params().
      out_features: true output dim O (<= w_pad.shape[1]).
    Returns:
      (B, O) float32 probabilities (softmax over last axis).
    """
    B, D = x.shape
    O_pad = w_pad.shape[1]
    x = x.astype(w_pad.dtype)
    x_bytes = x.dtype.itemsize
    w_bytes = w_pad.dtype.itemsize

    tb = _pick_tile_b(B, tile_b, D, O_pad, x_bytes, w_bytes, vmem_budget_bytes)
    B_pad = _round_up(B, tb)
    if B_pad != B:
        x = jnp.pad(x, ((0, B_pad - B), (0, 0)))
    grid = (B_pad // tb,)

    cost = pl.CostEstimate(
        flops=2 * B_pad * D * O_pad,
        transcendentals=B_pad * O_pad,
        bytes_accessed=(x_bytes * B_pad * D + w_bytes * D * O_pad
                        + 4 * O_pad + 4 * B_pad * O_pad),
    )

    out = pl.pallas_call(
        _dtnn_kernel,
        out_shape=jax.ShapeDtypeStruct((B_pad, O_pad), jnp.float32),
        grid=grid,
        in_specs=[
            pl.BlockSpec((tb, D), lambda i: (i, 0)),      # x: streamed per tile
            pl.BlockSpec((D, O_pad), lambda i: (0, 0)),   # W: VMEM-resident
            pl.BlockSpec((1, O_pad), lambda i: (0, 0)),   # b: VMEM-resident
        ],
        out_specs=pl.BlockSpec((tb, O_pad), lambda i: (i, 0)),
        compiler_params=pltpu.CompilerParams(
            dimension_semantics=("parallel",),
            vmem_limit_bytes=vmem_limit_bytes),
        cost_estimate=cost,
    )(x, w_pad, b_pad)

    if B_pad == B and O_pad == out_features:
        return out                      # no slice pass when already aligned
    return out[:B, :out_features]


if __name__ == "__main__":
    # Small shapes consistent with the module's forward:
    #   batch=8, in_features=32, num_bins=15 -> output dim = num_bins + 1 = 16
    batch, in_features, num_bins = 8, 32, 15
    out_dim = num_bins + 1

    key = jax.random.PRNGKey(0)
    kx, kw, kb = jax.random.split(key, 3)

    x = jax.random.normal(kx, (batch, in_features), dtype=jnp.float32)

    # Deterministic init mimicking nn.Linear's uniform(-1/sqrt(D), 1/sqrt(D)).
    bound = 1.0 / jnp.sqrt(jnp.float32(in_features))
    weight = jax.random.uniform(kw, (out_dim, in_features),
                                minval=-bound, maxval=bound, dtype=jnp.float32)
    bias = jax.random.uniform(kb, (out_dim,),
                              minval=-bound, maxval=bound, dtype=jnp.float32)

    ref = jax.nn.softmax(x @ weight.T + bias, axis=-1)

    # --- f32 path: strict check -------------------------------------------
    w_pad, b_pad, O = prepare_params(weight, bias, param_dtype=jnp.float32)
    out = jax.block_until_ready(discrete_time_nn_forward(x, w_pad, b_pad, O))
    assert out.shape == (batch, out_dim)
    assert jnp.allclose(out, ref, atol=1e-5, rtol=1e-5), \
        float(jnp.max(jnp.abs(out - ref)))
    assert jnp.allclose(jnp.sum(out, axis=-1), 1.0, atol=1e-5)

    # --- bf16 param/activation path: halved HBM traffic, looser tolerance ---
    w_pad16, b_pad16, _ = prepare_params(weight, bias, param_dtype=jnp.bfloat16)
    out16 = jax.block_until_ready(
        discrete_time_nn_forward(x, w_pad16, b_pad16, O))
    assert out16.shape == (batch, out_dim)
    assert jnp.allclose(out16, ref, atol=5e-3, rtol=5e-2), \
        float(jnp.max(jnp.abs(out16 - ref)))

    print("KERNEL_OK")
</pallas_src>

<mosaic_0001>
module attributes {stable_mosaic.version = 11 : i64} {
  func.func @_dtnn_kernel(%arg0: i32, %arg1: memref<8x32xf32, #tpu.memory_space<vmem>>, %arg2: memref<32x128xf32, #tpu.memory_space<vmem>>, %arg3: memref<1x128xf32, #tpu.memory_space<vmem>>, %arg4: memref<8x128xf32, #tpu.memory_space<vmem>>) attributes {dimension_semantics = [#tpu.dimension_semantics<parallel>], iteration_bounds = array<i64: 1>, scalar_prefetch = 0 : i64, scratch_operands = 0 : i64, tpu.core_type = #tpu.core_type<tc>, window_params = [{transform_indices = @transform_0, window_bounds = array<i64: 8, 32>}, {pipeline_mode = #tpu.pipeline_mode<synchronous>, transform_indices = @transform_1, window_bounds = array<i64: 32, 128>}, {pipeline_mode = #tpu.pipeline_mode<synchronous>, transform_indices = @transform_2, window_bounds = array<i64: 1, 128>}, {transform_indices = @transform_3, window_bounds = array<i64: 8, 128>}]} {
    %c0 = arith.constant 0 : index
    %c0_0 = arith.constant 0 : index
    %0 = vector.load %arg1[%c0, %c0_0] : memref<8x32xf32, #tpu.memory_space<vmem>>, vector<8x32xf32>
    %c0_1 = arith.constant 0 : index
    %c0_2 = arith.constant 0 : index
    %1 = vector.load %arg2[%c0_1, %c0_2] : memref<32x128xf32, #tpu.memory_space<vmem>>, vector<32x128xf32>
    %cst = arith.constant dense<0.000000e+00> : vector<8x128xf32>
    %2 = tpu.matmul %0, %1, %cst {dimension_numbers = #tpu.dot_dimension_numbers<[1], [0], [0], [1], [0, 0, 1, 1], [], []>} : vector<8x32xf32>, vector<32x128xf32>, vector<8x128xf32> -> vector<8x128xf32>
    %c0_3 = arith.constant 0 : index
    %c0_4 = arith.constant 0 : index
    %3 = vector.load %arg3[%c0_3, %c0_4] : memref<1x128xf32, #tpu.memory_space<vmem>>, vector<1x128xf32>
    %4 = vector.broadcast %3 : vector<1x128xf32> to vector<8x128xf32>
    %5 = arith.addf %2, %4 : vector<8x128xf32>
    %cst_5 = arith.constant dense<0xFF800000> : vector<8xf32>
    %6 = vector.multi_reduction <maximumf>, %5, %cst_5 [1] : vector<8x128xf32> to vector<8xf32>
    %7 = vector.shape_cast %6 : vector<8xf32> to vector<8x1xf32>
    %8 = vector.broadcast %7 : vector<8x1xf32> to vector<8x128xf32>
    %9 = arith.subf %5, %8 : vector<8x128xf32>
    %10 = math.exp %9 : vector<8x128xf32>
    %cst_6 = arith.constant dense<0.000000e+00> : vector<8xf32>
    %11 = vector.multi_reduction <add>, %10, %cst_6 [1] : vector<8x128xf32> to vector<8xf32>
    %12 = vector.shape_cast %11 : vector<8xf32> to vector<8x1xf32>
    %13 = vector.broadcast %12 : vector<8x1xf32> to vector<8x128xf32>
    %14 = arith.divf %10, %13 : vector<8x128xf32>
    %c0_7 = arith.constant 0 : index
    %c0_8 = arith.constant 0 : index
    %15 = vector.load %arg4[%c0_7, %c0_8] : memref<8x128xf32, #tpu.memory_space<vmem>>, vector<8x128xf32>
    tpu.vector_store %arg4[%c0_7, %c0_8], %14 {strides = array<i32>} : memref<8x128xf32, #tpu.memory_space<vmem>>, vector<8x128xf32>,
    return
  }
  func.func @transform_0(%arg0: i32) -> (i32, i32) {
    %c0_i32 = arith.constant 0 : i32
    %c0_i32_0 = arith.constant 0 : i32
    return %arg0, %c0_i32 : i32, i32
  }
  func.func @transform_1(%arg0: i32) -> (i32, i32) {
    %c0_i32 = arith.constant 0 : i32
    %c0_i32_0 = arith.constant 0 : i32
    %c0_i32_1 = arith.constant 0 : i32
    return %c0_i32, %c0_i32_0 : i32, i32
  }
  func.func @transform_2(%arg0: i32) -> (i32, i32) {
    %c0_i32 = arith.constant 0 : i32
    %c0_i32_0 = arith.constant 0 : i32
    %c0_i32_1 = arith.constant 0 : i32
    return %c0_i32, %c0_i32_0 : i32, i32
  }
  func.func @transform_3(%arg0: i32) -> (i32, i32) {
    %c0_i32 = arith.constant 0 : i32
    %c0_i32_0 = arith.constant 0 : i32
    return %arg0, %c0_i32 : i32, i32
  }
}

</mosaic_0001>

<bundles_post_ra>
// kernel: tpu_custom_call.1
= control target key start
LH: loop header
LB: loop body
LE: loop exit
PB: predicated region body
PF: predicated region fallthrough
CT: control target
= control target key end

     0   :  { %8 = vsyncpa [#allocation3], 0  ;;  %s287_s0 = inlined_call_operand.hbm [shape: f32[8,32], index: 0, kind: input, shape index: {}]   ;;  %s288_s1 = inlined_call_operand.hbm [shape: f32[32,128], index: 1, kind: input, shape index: {}]   ;;  %s289_s2 = inlined_call_operand.vmem [shape: f32[1,128], index: 2, kind: input, shape index: {}]   ;;  %s290_s3 = inlined_call_operand.hbm [shape: f32[8,128], index: 3, kind: output, shape index: {}]  }
   0x1   :  { %9 = vsyncpa [#allocation6], 0 }
   0x2   :  { %10 = vsyncpa [#allocation4], 0  ;;  %s248_s12 = smov [#allocation2]   ;;  %s249_s14 = smov [#allocation5]  }
   0x3   :  { %s17_s13 = sshll.u32 %s248_s12, 4  ;;  %s26_s15 = sshll.u32 %s249_s14, 4  ;;  %s18_s13 = int_to_ptr.vmem [resolvable:$true] %s17_s13  ;;  %s27_s15 = int_to_ptr.vmem [resolvable:$true] %s26_s15 }
   0x4   :  { %s190_s16 = scalar_lea.vmem %s18_s13, 128  ;;  %p195_p1 = scmp.lt.s32.totalorder %s18_s13, %s18_s13 }
   0x5   :  { %p191_p0 = scmp.ne.s32.totalorder %s18_s13, %s190_s16  ;;  %p196_p2 = scmp.lt.s32.totalorder %s190_s16, %s190_s16 }
   0x7   :  { %p197_p3 = por %p196_p2, %p195_p1 }
   0x9   :  { %p198_p4 = pnand %p197_p3, %p191_p0 }
   0xb   :  { %201 = shalt.err (!%p198_p4)
}
   0xc   :  { %20 = dma.hbm_to_vmem [thread:$0]  %s287_s0, 128, %s18_s13, [#allocation3]  }
   0xd   :  { %s210_s19 = scalar_lea.vmem %s27_s15, 512  ;;  %p215_p6 = scmp.lt.s32.totalorder %s27_s15, %s27_s15 }
   0xe   :  { %p211_p5 = scmp.ne.s32.totalorder %s27_s15, %s210_s19  ;;  %p216_p7 = scmp.lt.s32.totalorder %s210_s19, %s210_s19 }
  0x10   :  { %p217_p8 = por %p216_p7, %p215_p6 }
  0x12   :  { %p218_p9 = pnand %p217_p8, %p211_p5 }
  0x14   :  { %221 = shalt.err (!%p218_p9)
}
  0x15   :  { %s250_s20 = smov 128   ;;  %s251_s21 = smov 8  }
  0x16   :  { %32 = dma.hbm_to_vmem [thread:$0]  %s288_s1, 512, %s27_s15, [#allocation6], %s250_s20, %s250_s20, %s251_s21  }
  0x17   :  { %242 = dma.done.wait [#allocation3], 128  }
  0x18   :  { %243 = vsyncadd [#allocation3], 4294967168 }
  0x19   :  { %244 = dma.done.wait [#allocation6], 512  }
  0x1a   :  { %245 = vsyncadd [#allocation6], 4294966784  ;;  %v252_v0 = vmov 0.0   ;;  %vm253_vm0 = vmmov 0   ;;  %v45_v1 = vld [vmem:[#allocation5 + $0x18] sm:$0xff]  ;;  %v44_v2 = vld [vmem:[#allocation5 + $0x10] sm:$0xff] }
  0x1b   :  { %160 = vmatprep.subr.mxu0 %v252_v0  ;;  %168 = vmatprep.mubr.msk.f32.mxu0 %vm253_vm0, %v252_v0  ;;  %v43_v3 = vld [vmem:[#allocation5 + $0x8] sm:$0xff]  ;;  %v42_v4 = vld [vmem:[#allocation5] sm:$0xff]  ;;  %v41_v5 = vld [vmem:[#allocation2] sm:$0xff]  ;;  %vm53_vm1 = vcmask 261120   ;;  %s254_s24 = smov [#allocation7]  }
  0x1c   :  { %161 = vmatpush3.msra.mxu0 %v45_v1  ;;  %v153_v6 = vld [vmem:[%s289_s2] ss:$0 sm:$0xff]  ;;  %s143_s25 = sshll.u32 %s254_s24, 4  ;;  %s144_s25 = int_to_ptr.vmem [resolvable:$true] %s143_s25 }
  0x1d   :  { %162 = vmatprep.subr.mxu0 %v252_v0  ;;  %s222_s26 = scalar_lea.vmem %s144_s25, 128  ;;  %p227_p11 = scmp.lt.s32.totalorder %s144_s25, %s144_s25 }
  0x1e   :  { %163 = vmatpush3.msra.mxu0 %v44_v2  ;;  %p223_p10 = scmp.ne.s32.totalorder %s144_s25, %s222_s26  ;;  %p228_p12 = scmp.lt.s32.totalorder %s222_s26, %s222_s26 }
  0x1f   :  { %164 = vmatprep.subr.mxu0 %v252_v0 }
  0x20   :  { %165 = vmatpush3.msra.mxu0 %v43_v3  ;;  %p229_p13 = por %p228_p12, %p227_p11 }
  0x21   :  { %166 = vmatprep.subr.mxu0 %v252_v0 }
  0x22   :  { %167 = vmatpush3.msra.mxu0 %v42_v4  ;;  %p230_p0 = pnand %p229_p13, %p223_p10 }
  0x23   :  { %169 = vmatmul.mubr.msk.f32.vlgmr.msra.gmra.mxu0 %vm53_vm1, %v41_v5 }
  0xe3   :  { %v123_v7 = vpop.f32.mrf.mxu0 }
  0xe4   :  { %v124_v8 = vadd.f32 %v153_v6, %v123_v7 }
  0xe5   :  { %v170_v9 = vpop.f32.mrf.mxu0 }
  0xe6   :  { %127 = vmax.xlane.f32.xlu0 %v124_v8 }
 0x16f   :  { %v128_v10 = vpop.xlane.xlu0 %127 }
 0x170   :  { %v129_v11 = vsub.f32 %v124_v8, %v128_v10 }
 0x172   :  { %v130_v12 = vmul.f32 1.442695, %v129_v11 }
 0x174   :  { %178 = vpow2.f32 %v130_v12 }
 0x181   :  { %v179_v13 = vpop.eup %178 }
 0x182   :  { %132 = vadd.xlane.f32.xlu0 %v179_v13 }
 0x20b   :  { %v133_v14 = vpop.xlane.xlu0 %132 }
 0x20c   :  { %180 = vrcp.f32 %v133_v14 }
 0x219   :  { %v181_v15 = vpop.eup %180 }
 0x21a   :  { %v135_v16 = vmul.f32 %v181_v15, %v179_v13 }
 0x21c   :  { %136 = vst [vmem:[#allocation7] sm:$0xff] %v135_v16 }
 0x21d   :  { %233 = shalt.err (!%p230_p0)
}
 0x21e   :  { %146 = dma.vmem_to_hbm [thread:$0]  %s144_s25, 128, %s290_s3, [#allocation4]  }
 0x21f   :  { %246 = dma.done.wait [#allocation4], 128  }
 0x220   :  { %247 = vsyncadd [#allocation4], 4294967168 }
 0x221   :  { %150 = vsyncpa [#allocation3], 1 }
 0x222   :  { %151 = vsyncpa [#allocation6], 1 }
 0x223   :  { %152 = vsyncpa [#allocation4], 1 }

</bundles_post_ra>
